<compile_context>
chip_gen: v5e
topology: v5e:2x2
jax: 0.10.0
libtpu: 0.0.40
codegen_flags: <defaults>
</compile_context>

<pallas_src>
import functools

import jax
import jax.numpy as jnp
from jax.experimental import pallas as pl
from jax.experimental.pallas import tpu as pltpu


def _round_up(x, m):
    return (x + m - 1) // m * m


def _vmem_capacity_bytes():
    try:
        info = pltpu.get_tpu_info()
        cap = getattr(info, "vmem_capacity_bytes", None)
        if cap:
            return int(cap)
    except Exception:
        pass
    return 64 << 20  # conservative default: v7x per-TensorCore VMEM


# ----------------------------------------------------------------------------
# Fast path: whole softmax row fits in a single output tile (grid_n == 1).
# ----------------------------------------------------------------------------
def _linear_softmax_single_kernel(x_ref, w_ref, o_ref, *, out_size, n_pad):
    # x_ref: (tile_b, k_pad)   w_ref: (k_pad, n_pad)   o_ref: (tile_b, n_pad)
    s = jnp.dot(x_ref[...], w_ref[...], preferred_element_type=jnp.float32)
    if n_pad != out_size:  # static: mask lane-padding columns out of the softmax
        col = jax.lax.broadcasted_iota(jnp.int32, s.shape, 1)
        s = jnp.where(col < out_size, s, -jnp.inf)
    m = jnp.max(s, axis=-1, keepdims=True)
    p = jnp.exp(s - m)
    denom = jnp.sum(p, axis=-1, keepdims=True)
    inv = pl.reciprocal(denom, approx=True)   # EUP slot, not a VPU divide
    inv = inv * (2.0 - denom * inv)           # one Newton step -> ~f32 accuracy
    o_ref[...] = (p * inv).astype(o_ref.dtype)


# ----------------------------------------------------------------------------
# General path: softmax row tiled over grid_n output tiles (reduction axis
# last, "arbitrary"). Raw f32 logits stored once; max tracked online; exp /
# sum / normalize deferred to the finalize step.
# ----------------------------------------------------------------------------
def _linear_softmax_kernel(x_ref, w_ref, o_ref, m_ref, acc_ref,
                           *, tile_n, out_size, n_pad):
    # x_ref  : (tile_b, k_pad)      compute dtype
    # w_ref  : (k_pad, tile_n)      compute dtype  (pre-transposed weight tile)
    # o_ref  : (tile_b, n_pad)      output dtype, resident across the n axis
    # m_ref  : (tile_b, 1)   f32    running row max
    # acc_ref: (tile_b, n_pad) f32  raw logits (each block written exactly once)
    grid_n = n_pad // tile_n
    j = pl.program_id(1)

    @pl.when(j == 0)
    def _():
        m_ref[...] = jnp.full(m_ref.shape, -jnp.inf, dtype=m_ref.dtype)

    s = jnp.dot(x_ref[...], w_ref[...], preferred_element_type=jnp.float32)

    start = pl.multiple_of(j * tile_n, 128)

    def _store_and_update(vals):
        acc_ref[:, pl.ds(start, tile_n)] = vals
        m_ref[...] = jnp.maximum(m_ref[...], jnp.max(vals, axis=-1, keepdims=True))

    if n_pad != out_size:
        # Only the last tile contains padded columns (padding < tile_n).
        valid_last = out_size - (grid_n - 1) * tile_n   # static Python int
        is_last = j == grid_n - 1

        @pl.when(jnp.logical_not(is_last))
        def _():
            _store_and_update(s)

        @pl.when(is_last)
        def _():
            col = jax.lax.broadcasted_iota(jnp.int32, s.shape, 1)
            _store_and_update(jnp.where(col < valid_last, s, -jnp.inf))
    else:
        _store_and_update(s)

    @pl.when(j == pl.num_programs(1) - 1)
    def _():
        tile_b = acc_ref.shape[0]
        m = m_ref[...]
        # Pass 1: exponentiate in place (block by block, so no full-row
        # temporary), accumulating the row sums.
        denom = jnp.zeros((tile_b, 1), jnp.float32)
        for jj in range(grid_n):
            st = jj * tile_n
            p = jnp.exp(acc_ref[:, st:st + tile_n] - m)
            acc_ref[:, st:st + tile_n] = p
            denom = denom + jnp.sum(p, axis=-1, keepdims=True)
        inv = pl.reciprocal(denom, approx=True)
        inv = inv * (2.0 - denom * inv)
        # Pass 2: normalize and store the lane-dense output row.
        for jj in range(grid_n):
            st = jj * tile_n
            o_ref[:, st:st + tile_n] = (acc_ref[:, st:st + tile_n] * inv
                                        ).astype(o_ref.dtype)


def nn_forward(x, weight, *, tile_b=None, tile_n=None,
               compute_dtype=jnp.bfloat16, out_dtype=None, use_pallas=None):
    """Fused Linear(bias=False) + Softmax(dim=-1).

    x      : (B, input_size)
    weight : (output_size, input_size)  -- PyTorch nn.Linear layout.
    """
    B, K = x.shape
    N, Kw = weight.shape
    assert K == Kw, "weight / input feature-size mismatch"

    out_dtype = x.dtype if out_dtype is None else out_dtype

    # A pallas_call is pure overhead for tiny problems; fall back to fused XLA.
    if use_pallas is None:
        use_pallas = (B * K * N) >= (1 << 18)
    if not use_pallas:
        logits = jnp.dot(x, weight.T, preferred_element_type=jnp.float32)
        return jax.nn.softmax(logits, axis=-1).astype(out_dtype)

    cdtype = compute_dtype if compute_dtype is not None else x.dtype
    x_c = x.astype(cdtype)
    # One-time wrapper transpose: kernel then runs a standard (M,K)x(K,N)
    # contraction — no risk of a per-step XLU transpose of the weight tile.
    w_t = weight.T.astype(cdtype)                      # (K, N)

    # --- tiling / padding ----------------------------------------------------
    k_pad = _round_up(K, 128)                          # lane-dense contraction dim
    if tile_n is None:
        tile_n = min(512, _round_up(N, 128))           # lane-dense, MXU friendly
    tile_n = max(128, _round_up(tile_n, 128))
    n_pad = _round_up(N, tile_n)
    grid_n = n_pad // tile_n

    if tile_b is None:
        # Big batch tile: amortize each streamed weight tile over more rows
        # (weight-HBM-bound at small tile_b on v6e/v7x).
        tile_b = min(512, _round_up(B, 8))
    tile_b = max(8, _round_up(tile_b, 8))

    in_isz = jnp.dtype(cdtype).itemsize
    out_isz = jnp.dtype(out_dtype).itemsize

    vmem_cap = _vmem_capacity_bytes()
    budget = max(vmem_cap - (8 << 20), 32 << 20)

    def footprint(tb):
        w_cols = n_pad if grid_n == 1 else tile_n
        return (2 * tb * k_pad * in_isz            # x tile (double-buffered)
                + 2 * k_pad * w_cols * in_isz      # weight tile (double-buffered)
                + 2 * tb * n_pad * out_isz         # output block
                + (0 if grid_n == 1 else tb * n_pad * 4)   # f32 logit scratch
                + tb * 128 * 4)                    # running max (lane-padded)

    while footprint(tile_b) > budget and tile_b > 8:
        tile_b = max(8, _round_up(tile_b // 2, 8))
    # TODO(synk): if footprint(8) still exceeds VMEM (very large K and/or
    # vocab-scale N), a K-tiled / two-pass HBM-spilled variant is needed.

    b_pad = _round_up(B, tile_b)
    if b_pad != B:
        x_c = jnp.pad(x_c, ((0, b_pad - B), (0, 0)))
    if k_pad != K:
        x_c = jnp.pad(x_c, ((0, 0), (0, k_pad - K)))   # zero-pad K: exact matmul
        w_t = jnp.pad(w_t, ((0, k_pad - K), (0, 0)))
    if n_pad != N:
        w_t = jnp.pad(w_t, ((0, 0), (0, n_pad - N)))

    vmem_limit = int(min(max(footprint(tile_b) + (4 << 20), 16 << 20), budget))

    if grid_n == 1:
        # Single-tile fast path: no scratch, no online-softmax machinery.
        kernel = functools.partial(_linear_softmax_single_kernel,
                                   out_size=N, n_pad=n_pad)
        out_padded = pl.pallas_call(
            kernel,
            out_shape=jax.ShapeDtypeStruct((b_pad, n_pad), out_dtype),
            grid=(b_pad // tile_b,),
            in_specs=[
                pl.BlockSpec((tile_b, k_pad), lambda i: (i, 0)),   # activations
                pl.BlockSpec((k_pad, n_pad), lambda i: (0, 0)),    # full weight
            ],
            out_specs=pl.BlockSpec((tile_b, n_pad), lambda i: (i, 0)),
            compiler_params=pltpu.CompilerParams(
                dimension_semantics=("parallel",),
                vmem_limit_bytes=vmem_limit,
            ),
        )(x_c, w_t)
    else:
        kernel = functools.partial(_linear_softmax_kernel, tile_n=tile_n,
                                   out_size=N, n_pad=n_pad)
        out_padded = pl.pallas_call(
            kernel,
            out_shape=jax.ShapeDtypeStruct((b_pad, n_pad), out_dtype),
            grid=(b_pad // tile_b, grid_n),
            in_specs=[
                pl.BlockSpec((tile_b, k_pad), lambda i, j: (i, 0)),  # activations
                pl.BlockSpec((k_pad, tile_n), lambda i, j: (0, j)),  # weight cols
            ],
            out_specs=pl.BlockSpec((tile_b, n_pad), lambda i, j: (i, 0)),
            scratch_shapes=[
                pltpu.VMEM((tile_b, 1), jnp.float32),       # running row max
                pltpu.VMEM((tile_b, n_pad), jnp.float32),   # raw f32 logits
            ],
            compiler_params=pltpu.CompilerParams(
                dimension_semantics=("parallel", "arbitrary"),
                vmem_limit_bytes=vmem_limit,
            ),
        )(x_c, w_t)

    return out_padded[:B, :N]


if __name__ == "__main__":
    key = jax.random.PRNGKey(0)
    kx, kw, kx2, kw2 = jax.random.split(key, 4)

    # --- module-scale demo: batch of feature vectors -> class probabilities --
    batch, input_size, output_size = 8, 32, 4
    x = jax.random.normal(kx, (batch, input_size), dtype=jnp.float32)
    # torch.nn.init.normal_(weight, 0.0, 1.0); weight shape (output_size, input_size)
    weight = jax.random.normal(kw, (output_size, input_size), dtype=jnp.float32)
    ref = jax.nn.softmax(x @ weight.T, axis=-1)

    # f32-operand Pallas path (tight tolerance) — single-tile fast path.
    out_f32 = jax.block_until_ready(
        nn_forward(x, weight, compute_dtype=jnp.float32, use_pallas=True))
    assert out_f32.shape == (batch, output_size)
    assert jnp.allclose(out_f32, ref, atol=1e-4, rtol=1e-4)
    assert jnp.allclose(jnp.sum(out_f32, axis=-1), jnp.ones((batch,)), atol=1e-3)

    # Default bf16-MXU path (looser tolerance for bf16 operands).
    out_bf16 = jax.block_until_ready(nn_forward(x, weight, use_pallas=True))
    assert out_bf16.shape == (batch, output_size)
    assert jnp.allclose(out_bf16, ref, atol=5e-2)
    assert jnp.allclose(jnp.sum(out_bf16, axis=-1), jnp.ones((batch,)), atol=1e-2)

    # --- exercise the multi-tile (online-softmax) path incl. padding mask ----
    B2, K2, N2 = 16, 40, 300
    x2 = jax.random.normal(kx2, (B2, K2), dtype=jnp.float32)
    w2 = jax.random.normal(kw2, (N2, K2), dtype=jnp.float32)
    ref2 = jax.nn.softmax(x2 @ w2.T, axis=-1)
    out2 = jax.block_until_ready(
        nn_forward(x2, w2, compute_dtype=jnp.float32, use_pallas=True,
                   tile_b=8, tile_n=128))   # grid = (2, 3), ragged N
    assert out2.shape == (B2, N2)
    assert jnp.allclose(out2, ref2, atol=1e-4, rtol=1e-4)
    assert jnp.allclose(jnp.sum(out2, axis=-1), jnp.ones((B2,)), atol=1e-3)

    print("KERNEL_OK")
</pallas_src>

<mosaic_0001>
module attributes {stable_mosaic.version = 11 : i64} {
  func.func @_linear_softmax_single_kernel(%arg0: i32, %arg1: memref<8x128xf32, #tpu.memory_space<vmem>>, %arg2: memref<128x128xf32, #tpu.memory_space<vmem>>, %arg3: memref<8x128xf32, #tpu.memory_space<vmem>>) attributes {dimension_semantics = [#tpu.dimension_semantics<parallel>], iteration_bounds = array<i64: 1>, scalar_prefetch = 0 : i64, scratch_operands = 0 : i64, tpu.core_type = #tpu.core_type<tc>, window_params = [{transform_indices = @transform_0, window_bounds = array<i64: 8, 128>}, {pipeline_mode = #tpu.pipeline_mode<synchronous>, transform_indices = @transform_1, window_bounds = array<i64: 128, 128>}, {transform_indices = @transform_2, window_bounds = array<i64: 8, 128>}]} {
    %c0 = arith.constant 0 : index
    %c0_0 = arith.constant 0 : index
    %0 = vector.load %arg1[%c0, %c0_0] : memref<8x128xf32, #tpu.memory_space<vmem>>, vector<8x128xf32>
    %c0_1 = arith.constant 0 : index
    %c0_2 = arith.constant 0 : index
    %1 = vector.load %arg2[%c0_1, %c0_2] : memref<128x128xf32, #tpu.memory_space<vmem>>, vector<128x128xf32>
    %cst = arith.constant dense<0.000000e+00> : vector<8x128xf32>
    %2 = tpu.matmul %0, %1, %cst {dimension_numbers = #tpu.dot_dimension_numbers<[1], [0], [0], [1], [0, 0, 1, 1], [], []>} : vector<8x128xf32>, vector<128x128xf32>, vector<8x128xf32> -> vector<8x128xf32>
    %3 = tpu.iota {dimensions = array<i32: 1>} : vector<8x128xi32>
    %c4_i32 = arith.constant 4 : i32
    %4 = vector.broadcast %c4_i32 : i32 to vector<8x128xi32>
    %5 = arith.cmpi slt, %3, %4 : vector<8x128xi32>
    %cst_3 = arith.constant 0xFF800000 : f32
    %6 = vector.broadcast %cst_3 : f32 to vector<8x128xf32>
    %7 = arith.select %5, %2, %6 : vector<8x128xi1>, vector<8x128xf32>
    %cst_4 = arith.constant dense<0xFF800000> : vector<8xf32>
    %8 = vector.multi_reduction <maximumf>, %7, %cst_4 [1] : vector<8x128xf32> to vector<8xf32>
    %9 = vector.shape_cast %8 : vector<8xf32> to vector<8x1xf32>
    %10 = vector.broadcast %9 : vector<8x1xf32> to vector<8x128xf32>
    %11 = arith.subf %7, %10 : vector<8x128xf32>
    %12 = math.exp %11 : vector<8x128xf32>
    %cst_5 = arith.constant dense<0.000000e+00> : vector<8xf32>
    %13 = vector.multi_reduction <add>, %12, %cst_5 [1] : vector<8x128xf32> to vector<8xf32>
    %14 = vector.shape_cast %13 : vector<8xf32> to vector<8x1xf32>
    %15 = tpu.reciprocal %14 {approx = true} : vector<8x1xf32> -> vector<8x1xf32>
    %16 = arith.mulf %14, %15 : vector<8x1xf32>
    %cst_6 = arith.constant 2.000000e+00 : f32
    %17 = vector.broadcast %cst_6 : f32 to vector<8x1xf32>
    %18 = arith.subf %17, %16 : vector<8x1xf32>
    %19 = arith.mulf %15, %18 : vector<8x1xf32>
    %20 = vector.broadcast %19 : vector<8x1xf32> to vector<8x128xf32>
    %21 = arith.mulf %12, %20 : vector<8x128xf32>
    %c0_7 = arith.constant 0 : index
    %c0_8 = arith.constant 0 : index
    %22 = vector.load %arg3[%c0_7, %c0_8] : memref<8x128xf32, #tpu.memory_space<vmem>>, vector<8x128xf32>
    tpu.vector_store %arg3[%c0_7, %c0_8], %21 {strides = array<i32>} : memref<8x128xf32, #tpu.memory_space<vmem>>, vector<8x128xf32>,
    return
  }
  func.func @transform_0(%arg0: i32) -> (i32, i32) {
    %c0_i32 = arith.constant 0 : i32
    %c0_i32_0 = arith.constant 0 : i32
    return %arg0, %c0_i32 : i32, i32
  }
  func.func @transform_1(%arg0: i32) -> (i32, i32) {
    %c0_i32 = arith.constant 0 : i32
    %c0_i32_0 = arith.constant 0 : i32
    %c0_i32_1 = arith.constant 0 : i32
    return %c0_i32, %c0_i32_0 : i32, i32
  }
  func.func @transform_2(%arg0: i32) -> (i32, i32) {
    %c0_i32 = arith.constant 0 : i32
    %c0_i32_0 = arith.constant 0 : i32
    return %arg0, %c0_i32 : i32, i32
  }
}

</mosaic_0001>

<bundles_post_ra>
// kernel: tpu_custom_call.1
= control target key start
LH: loop header
LB: loop body
LE: loop exit
PB: predicated region body
PF: predicated region fallthrough
CT: control target
= control target key end

     0   :  { %7 = vsyncpa [#allocation3], 0  ;;  %s230_s0 = inlined_call_operand.hbm [shape: f32[8,128], index: 0, kind: input, shape index: {}]   ;;  %s231_s1 = inlined_call_operand.hbm [shape: f32[128,128], index: 1, kind: input, shape index: {}]   ;;  %s232_s2 = inlined_call_operand.hbm [shape: f32[8,128], index: 2, kind: output, shape index: {}]  }
   0x1   :  { %8 = vsyncpa [#allocation6], 0 }
   0x2   :  { %9 = vsyncpa [#allocation4], 0  ;;  %s15_s11 = sshll.u32 %s230_s0, 4  ;;  %s201_s12 = smov [#allocation2]   ;;  %s16_s11 = int_to_ptr.hbm [resolvable:$true] %s15_s11 }
   0x3   :  { %s17_s13 = sshll.u32 %s201_s12, 4  ;;  %s25_s16 = sshll.u32 %s231_s1, 4  ;;  %s18_s13 = int_to_ptr.vmem [resolvable:$true] %s17_s13  ;;  %s26_s16 = int_to_ptr.hbm [resolvable:$true] %s25_s16 }
   0x4   :  { %20 = dma.hbm_to_vmem [thread:$0]  %s16_s11, 128, %s18_s13, [#allocation3]  }
   0x5   :  { %s202_s17 = smov [#allocation5]   ;;  %s203_s19 = smov 128  }
   0x6   :  { %s27_s18 = sshll.u32 %s202_s17, 4  ;;  %s204_s20 = smov 8   ;;  %s28_s18 = int_to_ptr.vmem [resolvable:$true] %s27_s18 }
   0x7   :  { %33 = dma.hbm_to_vmem [thread:$0]  %s26_s16, 2048, %s28_s18, [#allocation6], %s203_s19, %s203_s19, %s204_s20  }
   0x8   :  { %195 = dma.done.wait [#allocation3], 128  }
   0x9   :  { %196 = vsyncadd [#allocation3], 4294967168 }
   0xa   :  { %197 = dma.done.wait [#allocation6], 2048  }
   0xb   :  { %198 = vsyncadd [#allocation6], 4294965248  ;;  %v58_v0 = vld [vmem:[#allocation5 + $0x78] sm:$0xff]  ;;  %v57_v1 = vld [vmem:[#allocation5 + $0x70] sm:$0xff]  ;;  %v79_v17 = vlaneseq  ;;  %s205_s0 = smov [#allocation7]   ;;  %s103_s23 = sshll.u32 %s232_s2, 4  ;;  %s104_s23 = int_to_ptr.hbm [resolvable:$true] %s103_s23 }
   0xc   :  { %59 = vmatpush.msra.mxu0 %v58_v0  ;;  %v56_v2 = vld [vmem:[#allocation5 + $0x68] sm:$0xff]  ;;  %v55_v3 = vld [vmem:[#allocation5 + $0x60] sm:$0xff]  ;;  %v54_v4 = vld [vmem:[#allocation5 + $0x58] sm:$0xff]  ;;  %s101_s1 = sshll.u32 %s205_s0, 4  ;;  %s102_s1 = int_to_ptr.vmem [resolvable:$true] %s101_s1 }
   0xd   :  { %v53_v5 = vld [vmem:[#allocation5 + $0x50] sm:$0xff]  ;;  %v52_v6 = vld [vmem:[#allocation5 + $0x48] sm:$0xff]  ;;  %v51_v7 = vld [vmem:[#allocation5 + $0x40] sm:$0xff]  ;;  %v80_v18 = vand.u32 127, %v79_v17 }
   0xe   :  { %60 = vmatpush.msra.mxu0 %v57_v1  ;;  %v50_v8 = vld [vmem:[#allocation5 + $0x38] sm:$0xff]  ;;  %v49_v9 = vld [vmem:[#allocation5 + $0x30] sm:$0xff]  ;;  %v48_v10 = vld [vmem:[#allocation5 + $0x28] sm:$0xff] }
   0xf   :  { %v47_v11 = vld [vmem:[#allocation5 + $0x20] sm:$0xff]  ;;  %v46_v12 = vld [vmem:[#allocation5 + $0x18] sm:$0xff]  ;;  %v45_v13 = vld [vmem:[#allocation5 + $0x10] sm:$0xff]  ;;  %vm81_vm0 = vcmp.lt.s32.totalorder %v80_v18, 4 }
  0x10   :  { %61 = vmatpush.msra.mxu0 %v56_v2  ;;  %v44_v14 = vld [vmem:[#allocation5 + $0x8] sm:$0xff]  ;;  %v43_v15 = vld [vmem:[#allocation5] sm:$0xff]  ;;  %v42_v16 = vld [vmem:[#allocation2] sm:$0xff] }
  0x12   :  { %62 = vmatpush.msra.mxu0 %v55_v3 }
  0x14   :  { %63 = vmatpush.msra.mxu0 %v54_v4 }
  0x16   :  { %64 = vmatpush.msra.mxu0 %v53_v5 }
  0x18   :  { %65 = vmatpush.msra.mxu0 %v52_v6 }
  0x1a   :  { %66 = vmatpush.msra.mxu0 %v51_v7 }
  0x1c   :  { %67 = vmatpush.msra.mxu0 %v50_v8 }
  0x1e   :  { %68 = vmatpush.msra.mxu0 %v49_v9 }
  0x20   :  { %69 = vmatpush.msra.mxu0 %v48_v10 }
  0x22   :  { %70 = vmatpush.msra.mxu0 %v47_v11 }
  0x24   :  { %71 = vmatpush.msra.mxu0 %v46_v12 }
  0x26   :  { %72 = vmatpush.msra.mxu0 %v45_v13 }
  0x28   :  { %73 = vmatpush.msra.mxu0 %v44_v14 }
  0x2a   :  { %74 = vmatpush.msra.mxu0 %v43_v15 }
  0x2b   :  { %75 = vmatmul.f32.vlgmr.msra.gmra.mxu0 %v42_v16 }
  0xa8   :  { %v76_v19 = vpop.f32.mrf.mxu0 }
  0xa9   :  { %v82_v20 = vsel %vm81_vm0, %v76_v19, -inf }
  0xaa   :  { %83 = vmax.xlane.f32.xlu0 %v82_v20 }
 0x11d   :  { %v84_v21 = vpop.xlane.xlu0 %83 }
 0x11e   :  { %v85_v22 = vsub.f32 %v82_v20, %v84_v21 }
 0x120   :  { %v86_v23 = vmul.f32 1.442695, %v85_v22 }
 0x122   :  { %119 = vpow2.f32 %v86_v23 }
 0x128   :  { %v120_v24 = vpop.eup %119 }
 0x129   :  { %88 = vadd.xlane.f32.xlu0 %v120_v24 }
 0x19c   :  { %v89_v25 = vpop.xlane.xlu0 %88 }
 0x19d   :  { %121 = vrcp.f32 %v89_v25 }
 0x1a3   :  { %v122_v26 = vpop.eup %121 }
 0x1a4   :  { %v91_v27 = vmul.f32 %v122_v26, %v89_v25 }
 0x1a6   :  { %v92_v28 = vsub.f32 2.0, %v91_v27 }
 0x1a8   :  { %v93_v29 = vmul.f32 %v122_v26, %v92_v28 }
 0x1aa   :  { %v94_v30 = vmul.f32 %v120_v24, %v93_v29 }
 0x1ac   :  { %95 = vst [vmem:[#allocation7] sm:$0xff] %v94_v30 }
 0x1ad   :  { %106 = dma.vmem_to_hbm [thread:$0]  %s102_s1, 128, %s104_s23, [#allocation4]  }
 0x1ae   :  { %199 = dma.done.wait [#allocation4], 128  }
 0x1af   :  { %200 = vsyncadd [#allocation4], 4294967168 }
 0x1b0   :  { %111 = vsyncpa [#allocation3], 1 }
 0x1b1   :  { %112 = vsyncpa [#allocation6], 1 }
 0x1b2   :  { %113 = vsyncpa [#allocation4], 1 }

</bundles_post_ra>
